<compile_context>
chip_gen: v7x
topology: tpu7x:2x2x1
jax: 0.10.0
libtpu: 0.0.40
codegen_flags: <defaults>
</compile_context>

<pallas_src>
import jax
import jax.numpy as jnp
from jax.experimental import pallas as pl
from jax.experimental.pallas import tpu as pltpu

_LANE = 128


def _adaln_kernel(scale_ref, bias_ref, x_ref, o_ref):
    # scale_ref, bias_ref: (B, C) float32 tables in SMEM (whole array, fetched once).
    # x_ref, o_ref: (1, C, RT, 128) blocks (fast path) or (1, C, T) blocks (fallback).
    # Channel is always axis 1 of the block.
    b = pl.program_id(0)
    x = x_ref[...].astype(jnp.float32)
    c = x.shape[1]

    mean = jnp.mean(x, axis=1, keepdims=True)
    diff = x - mean
    # Unbiased variance like torch.std (divides by C-1; C == 1 -> inf/nan, same as torch).
    var = jnp.sum(diff * diff, axis=1, keepdims=True) / jnp.float32(c - 1)
    # Exact divide: kernel is HBM-bandwidth-bound, so this costs ~0 wall time and keeps
    # numerical parity with the PyTorch reference (approx reciprocal needed 5e-3 tol).
    inv = 1.0 / (jnp.sqrt(var) + 1e-6)

    inv0 = inv[:, 0]                              # (1, RT, 128) or (1, T)
    for ch in range(c):                           # static unroll; C is small
        s = scale_ref[b, ch]                      # SMEM scalar loads
        t = bias_ref[b, ch]
        o_ref[:, ch] = (diff[:, ch] * (inv0 * s) + t).astype(o_ref.dtype)


def adaptive_layer_norm(x, style, scale_w, scale_b, bias_w, bias_b):
    """x: (B, C, H, W) NCHW; style: (B, ada_size). Returns (B, C, H, W)."""
    B, C, H, W = x.shape
    HW = H * W
    itemsize = jnp.dtype(x.dtype).itemsize

    # ---- hoisted, grid-invariant style affine (tiny matmuls; done once by XLA) ----
    stylef = style.astype(jnp.float32)
    scale = stylef @ scale_w.astype(jnp.float32).T + scale_b.astype(jnp.float32)
    scale = scale - jnp.mean(scale, axis=1, keepdims=True) + 1.0    # (B, C) f32
    bias = stylef @ bias_w.astype(jnp.float32).T + bias_b.astype(jnp.float32)
    bias = bias - jnp.mean(bias, axis=1, keepdims=True)             # (B, C) f32

    # ---- generation-aware VMEM budget ----
    vmem_cap = 64 * 1024 * 1024
    try:
        vmem_cap = int(getattr(pltpu.get_tpu_info(), "vmem_capacity_bytes", vmem_cap))
    except Exception:
        pass  # conservative fallback (treated as a 64 MiB part, e.g. v7x)
    vmem_limit = 64 * 1024 * 1024 if vmem_cap >= 128 * 1024 * 1024 else 32 * 1024 * 1024
    # Budget for block sizing: in+out blocks double-buffered in the HBM dtype plus ~3
    # full-size f32 temporaries (upcast, diff, per-channel result); keep it at half the
    # scoped limit to leave headroom for compiler scratch.
    budget = vmem_limit // 2
    bytes_per_elem = 4 * itemsize + 3 * 4

    if HW % _LANE == 0:
        # Fast path: sublane-dense layout (B, C, rows, 128); channel not on sublanes.
        rows = HW // _LANE
        per_row = C * _LANE * bytes_per_elem
        rt = max(8, (budget // per_row) // 8 * 8)
        rt = rows if rows <= rt else rt
        # Guarantee >= 2 grid steps so both v7x TensorCores stream HBM concurrently.
        if B * pl.cdiv(rows, rt) < 2 and rows >= 16:
            rt = max(8, (rows // 2) // 8 * 8)
        grid = (B, pl.cdiv(rows, rt))
        x_in = x.reshape(B, C, rows, _LANE)          # trailing-dim split: no copy
        blk = (1, C, rt, _LANE)
        idx = lambda b, r: (b, 0, r, 0)
        out_shape = jax.ShapeDtypeStruct((B, C, rows, _LANE), x.dtype)
    else:
        # Fallback for HW not a multiple of 128: lane-flat layout with C on sublanes
        # (sublane-padded when C < 8).  No explicit pad/slice: Pallas masks the partial
        # last tile at writeback; padded columns in the boundary block compute garbage
        # per-column only and are never stored.
        if HW >= _LANE:
            per_col = C * bytes_per_elem
            tile = max(_LANE, (budget // per_col) // _LANE * _LANE)
            tile = min(tile, (HW // _LANE) * _LANE)
        else:
            tile = HW                                # block dim == full dim (allowed)
        grid = (B, pl.cdiv(HW, tile))
        x_in = x.reshape(B, C, HW)                   # trailing-dim merge: no copy
        blk = (1, C, tile)
        idx = lambda b, t: (b, 0, t)
        out_shape = jax.ShapeDtypeStruct((B, C, HW), x.dtype)

    out = pl.pallas_call(
        _adaln_kernel,
        out_shape=out_shape,
        grid_spec=pltpu.PrefetchScalarGridSpec(
            num_scalar_prefetch=0,
            grid=grid,
            in_specs=[
                pl.BlockSpec(memory_space=pltpu.MemorySpace.SMEM),  # scale (B, C)
                pl.BlockSpec(memory_space=pltpu.MemorySpace.SMEM),  # bias  (B, C)
                pl.BlockSpec(blk, idx),
            ],
            out_specs=pl.BlockSpec(blk, idx),
        ),
        compiler_params=pltpu.CompilerParams(
            dimension_semantics=("parallel", "parallel"),
            vmem_limit_bytes=vmem_limit,
        ),
    )(scale, bias, x_in)

    return out.reshape(B, C, H, W)


def _reference(x, style, scale_w, scale_b, bias_w, bias_b):
    mean = jnp.mean(x, axis=1, keepdims=True)
    std = jnp.std(x, axis=1, keepdims=True, ddof=1)   # torch.std default: unbiased
    scale = style @ scale_w.T + scale_b               # (B, C)
    scale = (scale - scale.mean(axis=1, keepdims=True) + 1.0)[:, :, None, None]
    bias = style @ bias_w.T + bias_b
    bias = (bias - bias.mean(axis=1, keepdims=True))[:, :, None, None]
    return scale * (x - mean) / (std + 1e-6) + bias


if __name__ == "__main__":
    # module config: in_size = channels = 4, ada_size = 8
    B, C, H, W = 2, 4, 16, 16
    A = 8

    key = jax.random.PRNGKey(0)
    k_x, k_s, k_sw, k_sb, k_bw, k_bb = jax.random.split(key, 6)

    x = jax.random.normal(k_x, (B, C, H, W), dtype=jnp.float32)
    style = jax.random.normal(k_s, (B, A), dtype=jnp.float32)

    # nn.Linear(ada_size, in_size): weight (in_size, ada_size), bias (in_size,)
    bound = 1.0 / jnp.sqrt(A)
    scale_w = jax.random.uniform(k_sw, (C, A), jnp.float32, -bound, bound)
    scale_b = jax.random.uniform(k_sb, (C,), jnp.float32, -bound, bound)
    bias_w = jax.random.uniform(k_bw, (C, A), jnp.float32, -bound, bound)
    bias_b = jax.random.uniform(k_bb, (C,), jnp.float32, -bound, bound)

    out = adaptive_layer_norm(x, style, scale_w, scale_b, bias_w, bias_b)
    out = jax.block_until_ready(out)

    ref = _reference(x, style, scale_w, scale_b, bias_w, bias_b)
    assert out.shape == (B, C, H, W)
    # Exact divide inside the kernel -> tight tolerance (was 5e-3 with approx recip).
    assert jnp.allclose(out, ref, atol=1e-4, rtol=1e-4), "mismatch vs reference"

    print("KERNEL_OK")
</pallas_src>

<mosaic_0001>
module attributes {stable_mosaic.version = 11 : i64} {
  func.func @_adaln_kernel(%arg0: i32, %arg1: i32, %arg2: memref<2x4xf32, #tpu.memory_space<smem>>, %arg3: memref<2x4xf32, #tpu.memory_space<smem>>, %arg4: memref<1x4x2x128xf32, #tpu.memory_space<vmem>>, %arg5: memref<1x4x2x128xf32, #tpu.memory_space<vmem>>) attributes {dimension_semantics = [#tpu.dimension_semantics<parallel>, #tpu.dimension_semantics<parallel>], iteration_bounds = array<i64: 2, 1>, scalar_prefetch = 0 : i64, scratch_operands = 0 : i64, tpu.core_type = #tpu.core_type<tc>, window_params = [{transform_indices = @transform_0, window_bounds = array<i64: 2, 4>}, {transform_indices = @transform_1, window_bounds = array<i64: 2, 4>}, {transform_indices = @transform_2, window_bounds = array<i64: 1, 4, 2, 128>}, {transform_indices = @transform_3, window_bounds = array<i64: 1, 4, 2, 128>}]} {
    %c0 = arith.constant 0 : index
    %c0_0 = arith.constant 0 : index
    %c0_1 = arith.constant 0 : index
    %c0_2 = arith.constant 0 : index
    %0 = vector.load %arg4[%c0, %c0_0, %c0_1, %c0_2] : memref<1x4x2x128xf32, #tpu.memory_space<vmem>>, vector<1x4x2x128xf32>
    %cst = arith.constant dense<0.000000e+00> : vector<1x2x128xf32>
    %1 = vector.multi_reduction <add>, %0, %cst [1] : vector<1x4x2x128xf32> to vector<1x2x128xf32>
    %2 = vector.shape_cast %1 : vector<1x2x128xf32> to vector<1x1x2x128xf32>
    %cst_3 = arith.constant 4.000000e+00 : f32
    %3 = vector.broadcast %cst_3 : f32 to vector<1x1x2x128xf32>
    %4 = arith.divf %2, %3 : vector<1x1x2x128xf32>
    %5 = vector.broadcast %4 : vector<1x1x2x128xf32> to vector<1x4x2x128xf32>
    %6 = arith.subf %0, %5 : vector<1x4x2x128xf32>
    %7 = arith.mulf %6, %6 : vector<1x4x2x128xf32>
    %cst_4 = arith.constant dense<0.000000e+00> : vector<1x2x128xf32>
    %8 = vector.multi_reduction <add>, %7, %cst_4 [1] : vector<1x4x2x128xf32> to vector<1x2x128xf32>
    %9 = vector.shape_cast %8 : vector<1x2x128xf32> to vector<1x1x2x128xf32>
    %cst_5 = arith.constant 3.000000e+00 : f32
    %10 = vector.broadcast %cst_5 : f32 to vector<1x1x2x128xf32>
    %11 = arith.divf %9, %10 : vector<1x1x2x128xf32>
    %12 = math.sqrt %11 : vector<1x1x2x128xf32>
    %cst_6 = arith.constant 9.99999997E-7 : f32
    %13 = vector.broadcast %cst_6 : f32 to vector<1x1x2x128xf32>
    %14 = arith.addf %12, %13 : vector<1x1x2x128xf32>
    %cst_7 = arith.constant 1.000000e+00 : f32
    %15 = vector.broadcast %cst_7 : f32 to vector<1x1x2x128xf32>
    %16 = arith.divf %15, %14 : vector<1x1x2x128xf32>
    %17 = vector.shape_cast %16 : vector<1x1x2x128xf32> to vector<1x2x128xf32>
    %18 = arith.index_cast %arg0 : i32 to index
    %c0_8 = arith.constant 0 : index
    %19 = memref.load %arg2[%18, %c0_8] : memref<2x4xf32, #tpu.memory_space<smem>>
    %20 = arith.index_cast %arg0 : i32 to index
    %c0_9 = arith.constant 0 : index
    %21 = memref.load %arg3[%20, %c0_9] : memref<2x4xf32, #tpu.memory_space<smem>>
    %22 = vector.extract_strided_slice %6 {offsets = [0, 0, 0, 0], sizes = [1, 1, 2, 128], strides = [1, 1, 1, 1]} : vector<1x4x2x128xf32> to vector<1x1x2x128xf32>
    %23 = vector.shape_cast %22 : vector<1x1x2x128xf32> to vector<1x2x128xf32>
    %24 = vector.broadcast %19 : f32 to vector<1x2x128xf32>
    %25 = arith.mulf %17, %24 : vector<1x2x128xf32>
    %26 = arith.mulf %23, %25 : vector<1x2x128xf32>
    %27 = vector.broadcast %21 : f32 to vector<1x2x128xf32>
    %28 = arith.addf %26, %27 : vector<1x2x128xf32>
    %c0_10 = arith.constant 0 : index
    %c0_11 = arith.constant 0 : index
    %c0_12 = arith.constant 0 : index
    %c0_13 = arith.constant 0 : index
    %29 = vector.load %arg5[%c0_10, %c0_11, %c0_12, %c0_13] : memref<1x4x2x128xf32, #tpu.memory_space<vmem>>, vector<1x1x2x128xf32>
    %30 = vector.shape_cast %29 : vector<1x1x2x128xf32> to vector<1x2x128xf32>
    %31 = vector.shape_cast %28 : vector<1x2x128xf32> to vector<1x1x2x128xf32>
    tpu.vector_store %arg5[%c0_10, %c0_11, %c0_12, %c0_13], %31 {strides = array<i32>} : memref<1x4x2x128xf32, #tpu.memory_space<vmem>>, vector<1x1x2x128xf32>,
    %32 = arith.index_cast %arg0 : i32 to index
    %c1 = arith.constant 1 : index
    %33 = memref.load %arg2[%32, %c1] : memref<2x4xf32, #tpu.memory_space<smem>>
    %34 = arith.index_cast %arg0 : i32 to index
    %c1_14 = arith.constant 1 : index
    %35 = memref.load %arg3[%34, %c1_14] : memref<2x4xf32, #tpu.memory_space<smem>>
    %36 = vector.extract_strided_slice %6 {offsets = [0, 1, 0, 0], sizes = [1, 1, 2, 128], strides = [1, 1, 1, 1]} : vector<1x4x2x128xf32> to vector<1x1x2x128xf32>
    %37 = vector.shape_cast %36 : vector<1x1x2x128xf32> to vector<1x2x128xf32>
    %38 = vector.broadcast %33 : f32 to vector<1x2x128xf32>
    %39 = arith.mulf %17, %38 : vector<1x2x128xf32>
    %40 = arith.mulf %37, %39 : vector<1x2x128xf32>
    %41 = vector.broadcast %35 : f32 to vector<1x2x128xf32>
    %42 = arith.addf %40, %41 : vector<1x2x128xf32>
    %c0_15 = arith.constant 0 : index
    %c1_16 = arith.constant 1 : index
    %c0_17 = arith.constant 0 : index
    %c0_18 = arith.constant 0 : index
    %43 = vector.load %arg5[%c0_15, %c1_16, %c0_17, %c0_18] : memref<1x4x2x128xf32, #tpu.memory_space<vmem>>, vector<1x1x2x128xf32>
    %44 = vector.shape_cast %43 : vector<1x1x2x128xf32> to vector<1x2x128xf32>
    %45 = vector.shape_cast %42 : vector<1x2x128xf32> to vector<1x1x2x128xf32>
    tpu.vector_store %arg5[%c0_15, %c1_16, %c0_17, %c0_18], %45 {strides = array<i32>} : memref<1x4x2x128xf32, #tpu.memory_space<vmem>>, vector<1x1x2x128xf32>,
    %46 = arith.index_cast %arg0 : i32 to index
    %c2 = arith.constant 2 : index
    %47 = memref.load %arg2[%46, %c2] : memref<2x4xf32, #tpu.memory_space<smem>>
    %48 = arith.index_cast %arg0 : i32 to index
    %c2_19 = arith.constant 2 : index
    %49 = memref.load %arg3[%48, %c2_19] : memref<2x4xf32, #tpu.memory_space<smem>>
    %50 = vector.extract_strided_slice %6 {offsets = [0, 2, 0, 0], sizes = [1, 1, 2, 128], strides = [1, 1, 1, 1]} : vector<1x4x2x128xf32> to vector<1x1x2x128xf32>
    %51 = vector.shape_cast %50 : vector<1x1x2x128xf32> to vector<1x2x128xf32>
    %52 = vector.broadcast %47 : f32 to vector<1x2x128xf32>
    %53 = arith.mulf %17, %52 : vector<1x2x128xf32>
    %54 = arith.mulf %51, %53 : vector<1x2x128xf32>
    %55 = vector.broadcast %49 : f32 to vector<1x2x128xf32>
    %56 = arith.addf %54, %55 : vector<1x2x128xf32>
    %c0_20 = arith.constant 0 : index
    %c2_21 = arith.constant 2 : index
    %c0_22 = arith.constant 0 : index
    %c0_23 = arith.constant 0 : index
    %57 = vector.load %arg5[%c0_20, %c2_21, %c0_22, %c0_23] : memref<1x4x2x128xf32, #tpu.memory_space<vmem>>, vector<1x1x2x128xf32>
    %58 = vector.shape_cast %57 : vector<1x1x2x128xf32> to vector<1x2x128xf32>
    %59 = vector.shape_cast %56 : vector<1x2x128xf32> to vector<1x1x2x128xf32>
    tpu.vector_store %arg5[%c0_20, %c2_21, %c0_22, %c0_23], %59 {strides = array<i32>} : memref<1x4x2x128xf32, #tpu.memory_space<vmem>>, vector<1x1x2x128xf32>,
    %60 = arith.index_cast %arg0 : i32 to index
    %c3 = arith.constant 3 : index
    %61 = memref.load %arg2[%60, %c3] : memref<2x4xf32, #tpu.memory_space<smem>>
    %62 = arith.index_cast %arg0 : i32 to index
    %c3_24 = arith.constant 3 : index
    %63 = memref.load %arg3[%62, %c3_24] : memref<2x4xf32, #tpu.memory_space<smem>>
    %64 = vector.extract_strided_slice %6 {offsets = [0, 3, 0, 0], sizes = [1, 1, 2, 128], strides = [1, 1, 1, 1]} : vector<1x4x2x128xf32> to vector<1x1x2x128xf32>
    %65 = vector.shape_cast %64 : vector<1x1x2x128xf32> to vector<1x2x128xf32>
    %66 = vector.broadcast %61 : f32 to vector<1x2x128xf32>
    %67 = arith.mulf %17, %66 : vector<1x2x128xf32>
    %68 = arith.mulf %65, %67 : vector<1x2x128xf32>
    %69 = vector.broadcast %63 : f32 to vector<1x2x128xf32>
    %70 = arith.addf %68, %69 : vector<1x2x128xf32>
    %c0_25 = arith.constant 0 : index
    %c3_26 = arith.constant 3 : index
    %c0_27 = arith.constant 0 : index
    %c0_28 = arith.constant 0 : index
    %71 = vector.load %arg5[%c0_25, %c3_26, %c0_27, %c0_28] : memref<1x4x2x128xf32, #tpu.memory_space<vmem>>, vector<1x1x2x128xf32>
    %72 = vector.shape_cast %71 : vector<1x1x2x128xf32> to vector<1x2x128xf32>
    %73 = vector.shape_cast %70 : vector<1x2x128xf32> to vector<1x1x2x128xf32>
    tpu.vector_store %arg5[%c0_25, %c3_26, %c0_27, %c0_28], %73 {strides = array<i32>} : memref<1x4x2x128xf32, #tpu.memory_space<vmem>>, vector<1x1x2x128xf32>,
    return
  }
  func.func @transform_0(%arg0: i32, %arg1: i32) -> (i32, i32) {
    %c0_i32 = arith.constant 0 : i32
    %c0_i32_0 = arith.constant 0 : i32
    %c0_i32_1 = arith.constant 0 : i32
    return %c0_i32, %c0_i32_0 : i32, i32
  }
  func.func @transform_1(%arg0: i32, %arg1: i32) -> (i32, i32) {
    %c0_i32 = arith.constant 0 : i32
    %c0_i32_0 = arith.constant 0 : i32
    %c0_i32_1 = arith.constant 0 : i32
    return %c0_i32, %c0_i32_0 : i32, i32
  }
  func.func @transform_2(%arg0: i32, %arg1: i32) -> (i32, i32, i32, i32) {
    %c0_i32 = arith.constant 0 : i32
    %c0_i32_0 = arith.constant 0 : i32
    %c0_i32_1 = arith.constant 0 : i32
    return %arg0, %c0_i32, %arg1, %c0_i32_0 : i32, i32, i32, i32
  }
  func.func @transform_3(%arg0: i32, %arg1: i32) -> (i32, i32, i32, i32) {
    %c0_i32 = arith.constant 0 : i32
    %c0_i32_0 = arith.constant 0 : i32
    %c0_i32_1 = arith.constant 0 : i32
    return %arg0, %c0_i32, %arg1, %c0_i32_0 : i32, i32, i32, i32
  }
}

</mosaic_0001>

<bundles_post_ra>
// kernel: tpu_custom_call.1
= control target key start
LH: loop header
LB: loop body
LE: loop exit
PB: predicated region body
PF: predicated region fallthrough
CT: control target
= control target key end

     0   :  { %8 = vsyncpa [#allocation5], 0  ;;  %s971_s0 = inlined_call_operand.hbm [shape: f32[2,4], index: 0, kind: input, shape index: {}]   ;;  %s972_s1 = inlined_call_operand.vmem [shape: f32[2,4], index: 1, kind: input, shape index: {}]   ;;  %s973_s2 = inlined_call_operand.hbm [shape: f32[2,4,2,128], index: 2, kind: input, shape index: {}]   ;;  %s974_s3 = inlined_call_operand.hbm [shape: f32[2,4,2,128], index: 3, kind: output, shape index: {}]  }
   0x1   :  { %9 = vsyncpa [#allocation6], 0 }
   0x2   :  { %10 = vsyncpa [#allocation3], 0 }
   0x3   :  { %12 = vsyncpa [#allocation3 + $0x1], 0 }
   0x4   :  { %13 = vsyncpa [#allocation4], 0 }
   0x5   :  { %15 = vsyncpa [#allocation4 + $0x1], 0  ;;  %s729_s12 = smov 0   ;;  %s731_s13 = smov 0  }
   0x6   :  { %s733_s14 = smov 0   ;;  %s735_s15 = smov 0  }
   0x7   :  { %s737_s16 = smov 0   ;;  %s739_s17 = smov 0  }
   0x8 LB: > { %s435_s18 = sadd.s32 4294967295, %s699_s17   ;;  %s436_s19 = sadd.s32 4294967294, %s699_s17   ;;  %s699_s17 = sphi %s739_s17, %s21_s17   ;;  %s695_s16 = sphi %s737_s16, %s995_s16   ;;  %s691_s15 = sphi %s735_s15, %s994_s15   ;;  %s687_s14 = sphi %s733_s14, %s993_s14   ;;  %s683_s13 = sphi %s731_s13, %s992_s13   ;;  %s679_s12 = sphi %s729_s12, %s991_s12  }
   0x9   : > { %s84_s20 = sadd.s32 1, %s687_s14  ;;  %p91_p0 = scmp.ne.s32.totalorder %s687_s14, %s683_s13 }
   0xa   : > { %p92_p1 = scmp.eq.s32.totalorder %s699_s17, 0  ;;  %p97_p2 = scmp.ne.s32.totalorder %s683_s13, %s679_s12 }
   0xb   : > { %p767_p3 = scmp.eq.s32.totalorder %s435_s18, 0  ;;  %p123_p4 = scmp.eq.s32.totalorder %s435_s18, 1 }
   0xc   : > { %p93_p5 = por %p92_p1, %p91_p0  ;;  %p129_p6 = scmp.eq.s32.totalorder %s436_s19, 1 }
   0xd   : > { %s979_s21 = scalar_select %p767_p3, 1, 0 }
   0xe   : > { %p773_p7 = por %p767_p3, %p97_p2  ;;  %p777_p8 = por %p123_p4, %p91_p0 }
   0xf   : > { %p781_p9 = por %p129_p6, %p97_p2  ;;  %p437_p10 = scmp.ge.s32.totalorder %s699_s17, 1 }
  0x10   : > { %s980_s22 = scalar_select %p773_p7, 1, 0 }
  0x11   : > { %s981_s23 = scalar_select %p777_p8, 1, 0 }
  0x12   : > { %s982_s24 = scalar_select %p781_p9, 1, 0 }
  0x13   : > { %p136_p11 = scmp.lt.s32.totalorder %s699_s17, 3  ;;  %p489_p1 = scmp.lt.s32.totalorder %s699_s17, 2 }
  0x14   : > { %s158_s28 = sshll.u32 %s972_s1, 4  ;;  %s169_s4 = sand.u32 1, %s687_s14   ;;  %s159_s28 = int_to_ptr.vmem [resolvable:$true] %s158_s28 }
  0x15   : > { %p788_p13 = pnand %p437_p10, %p136_p11  ;;  %p798_p4 = pnand %p489_p1, %p93_p5 }
  0x16   : > { %s33_s5 = sadd.s32 1, %s695_s16  ;;  %s551_s8 = scalar_lea.hbm %s971_s0, 32 }
  0x17   : > { %p472_p0 = pneg %p788_p13  ;;  %p552_p5 = scmp.ne.s32.totalorder %s971_s0, %s551_s8 }
  0x18   : > { %p558_p1 = scmp.lt.u32.totalorder %s551_s8, %s971_s0 }
  0x19   : > { %p804_p2 = pnand %p472_p0, %p767_p3 }
  0x1b   : > { %p553_p6 = pneg %p804_p2 }
  0x1d   : > { %p554_p10 = pnand %p553_p6, %p552_p5 }
  0x1f   : > { %p555_p11 = pneg %p554_p10 }
  0x21   : > { %p560_p0 = pnand %p558_p1, %p555_p11 }
  0x23   : > { %563 = shalt.err (!%p560_p0)
}
  0x24   : > { %s701_s19 = smov [#allocation2]   ;;  %s564_s6 = scalar_lea.vmem %s159_s28, 32 }
  0x25   : > { %475 = dma.hbm_to_smem (!%p804_p2), %s971_s0, 32, %s701_s19, [#allocation5]  }
  0x26   : > { %p565_p12 = scmp.ne.s32.totalorder %s159_s28, %s564_s6  ;;  %p572_p7 = scmp.lt.s32.totalorder %s159_s28, %s159_s28 }
  0x27   : > { %p573_p5 = scmp.lt.s32.totalorder %s564_s6, %s564_s6 }
  0x28   : > { %p567_p9 = pnand %p565_p12, %p553_p6 }
  0x29   : > { %p574_p10 = por %p573_p5, %p572_p7 }
  0x2a   : > { %p568_p8 = pneg %p567_p9 }
  0x2c   : > { %p575_p3 = pnand %p574_p10, %p568_p8 }
  0x2e   : > { %578 = shalt.err (!%p575_p3)
}
  0x2f   : > { %s702_s7 = smov [#allocation7]   ;;  %p35_p11 = scmp.ge.s32.totalorder %s33_s5, 2 }
  0x30   : > { %478 = dma.vmem_to_smem (!%p804_p2), %s159_s28, 32, %s702_s7, [#allocation6]  }
  0x31   : > { %s441_s8 = sshll.u32 %s169_s4, 3  ;;  %s458_s9 = sshll.u32 %s695_s16, 7 }
  0x32   : > { %s997_s5 = smov (%p35_p11, %s33_s5), 0  ;;  %s836_s30 = scalar_lea.hbm %s973_s2, %s458_s9 }
  0x33   : > { %s79_s18 = ssub.s32 %s695_s16, %s997_s5  ;;  %s173_s19 = scalar_lea.vmem [#allocation8], %s441_s8 }
  0x34   : > { %s181_s28 = sshll.u32 %s173_s19, 4  ;;  %p82_p3 = scmp.eq.s32.totalorder %s79_s18, 0  ;;  %s840_s28 = int_to_ptr.vmem [resolvable:$true] %s181_s28 }
  0x35   : > { %s849_s27 = scalar_lea.sflag [#allocation3], %s169_s4  ;;  %s579_s6 = scalar_lea.hbm %s836_s30, 128 }
  0x36   : > { %s845_s26 = scalar_select %p82_p3, %s687_s14, %s84_s20  }
  0x37   : > { %p580_p7 = scmp.ne.s32.totalorder %s836_s30, %s579_s6  ;;  %p581_p8 = pneg %p798_p4 }
  0x38   : > { %s584_s9 = scalar_lea.hbm %s973_s2, 256  ;;  %p585_p2 = scmp.lt.u32.totalorder %s836_s30, %s973_s2 }
  0x39   : > { %p582_p9 = pnand %p581_p8, %p580_p7  ;;  %p586_p6 = scmp.lt.u32.totalorder %s584_s9, %s579_s6 }
  0x3a   : > { %p588_p0 = scmp.lt.u32.totalorder %s579_s6, %s836_s30 }
  0x3b   : > { %p583_p12 = pneg %p582_p9  ;;  %p587_p1 = por %p586_p6, %p585_p2 }
  0x3d   : > { %p589_p5 = por %p588_p0, %p587_p1 }
  0x3f   : > { %p590_p10 = pnand %p589_p5, %p583_p12 }
  0x41   : > { %593 = shalt.err (!%p590_p10)
}
  0x42   : > { %s594_s20 = scalar_lea.vmem %s840_s28, 128  ;;  %s703_s4 = smov [#allocation8]  }
  0x43   : > { %p595_p11 = scmp.ne.s32.totalorder %s840_s28, %s594_s20  ;;  %s599_s18 = sshll.u32 %s703_s4, 4  ;;  %s600_s18 = int_to_ptr.vmem [resolvable:$false] %s599_s18 }
  0x44   : > { %s601_s19 = scalar_lea.vmem %s600_s18, 256  ;;  %p602_p9 = scmp.lt.s32.totalorder %s840_s28, %s600_s18 }
  0x45   : > { %p597_p3 = pnand %p595_p11, %p581_p8  ;;  %p603_p2 = scmp.lt.s32.totalorder %s601_s19, %s594_s20 }
  0x47   : > { %p598_p7 = pneg %p597_p3  ;;  %p604_p6 = por %p603_p2, %p602_p9 }
  0x49   : > { %p605_p1 = pnand %p604_p6, %p598_p7 }
  0x4b   : > { %608 = shalt.err (!%p605_p1)
}
  0x4c   : > { %s704_s6 = smov 32   ;;  %s705_s7 = smov 2  }
  0x4d   : > { %482 = dma.hbm_to_vmem [thread:$0]  (!%p798_p4), %s836_s30, 128, %s840_s28, %s849_s27, %s704_s6, %s704_s6, %s705_s7  }
  0x4e   : > { %193 = sbr.rel (%p788_p13) target bundleno = 167 (0xa7), region = 32  ;;  %p986_p8 = scmp.ne.s32.totalorder (!%p788_p13), %s979_s21, 0 }
  0x55   : > { %662 = dma.done.wait (%p986_p8), [#allocation5], 32  }
  0x56   : > { %664 = vsyncadd (%p986_p8), [#allocation5], 4294967264 }
  0x57   : > { %666 = dma.done.wait (%p986_p8), [#allocation6], 32  }
  0x58   : > { %668 = vsyncadd (%p986_p8), [#allocation6], 4294967264  ;;  %s888_s8 = sand.u32 1, %s683_s13   ;;  %p987_p13 = scmp.ne.s32.totalorder %s980_s22, 0 }
  0x59   : > { %s447_s25 = sshll.u32 %s888_s8, 3  ;;  %s204_s29 = scalar_lea.sflag [#allocation3], %s888_s8 }
  0x5a   : > { %s207_s30 = scalar_lea.vmem [#allocation8], %s447_s25 }
  0x5b   : > { %670 = dma.done.wait (%p987_p13), %s204_s29, 128  }
  0x5c   : > { %672 = vsyncadd (%p987_p13), %s204_s29, 4294967168 }
  0x5d   : > { %212 = sfence }
  0x5e   : > { %v231_v0 = vld [vmem:[%s207_s30] sm:$0x3]  ;;  %v232_v1 = vld [vmem:[%s207_s30 + $0x2] sm:$0x3]  ;;  %vm235_vm0 = vcmask 1041408   ;;  %s907_s21 = sshll.u32 %s691_s15, 7 }
  0x5f   : > { %v233_v2 = vld [vmem:[%s207_s30 + $0x4] sm:$0x3]  ;;  %v234_v3 = vld [vmem:[%s207_s30 + $0x6] sm:$0x3]  ;;  %v236_v4 = vsel %vm235_vm0, %v231_v0, 0.0  ;;  %v237_v5 = vsel %vm235_vm0, %v232_v1, 0.0  ;;  %s922_s30 = scalar_lea.hbm %s974_s3, %s907_s21 }
  0x60   : > { %v238_v6 = vadd.f32 %v237_v5, %v236_v4  ;;  %v239_v7 = vsel %vm235_vm0, %v233_v2, 0.0  ;;  %v241_v8 = vsel %vm235_vm0, %v234_v3, 0.0  ;;  %s281_s22 = sadd.s32 1, %s907_s21  ;;  %s291_s28 = sadd.s32 2, %s907_s21 }
  0x61   : > { %s301_s27 = sadd.s32 3, %s907_s21  ;;  %s273_s9 = sld [smem:[#allocation2 + %s907_s21]] }
  0x62   : > { %v240_v9 = vadd.f32 %v239_v7, %v238_v6  ;;  %s282_s10 = sld [smem:[#allocation2 + %s281_s22]]  ;;  %s230_s6 = scalar_lea.vmem [#allocation9], %s447_s25 }
  0x63   : > { %s292_s11 = sld [smem:[#allocation2 + %s291_s28]]  ;;  %s326_s7 = sshll.u32 %s230_s6, 4  ;;  %s916_s7 = int_to_ptr.vmem [resolvable:$true] %s326_s7 }
  0x64   : > { %v242_v10 = vadd.f32 %v241_v8, %v240_v9  ;;  %s302_s15 = sld [smem:[#allocation2 + %s301_s27]]  ;;  %p988_p12 = scmp.ne.s32.totalorder %s981_s23, 0 }
  0x65   : > { %s274_s20 = sld [smem:[#allocation7 + %s907_s21]] }
  0x66   : > { %v244_v11 = vmul.f32 0.25, %v242_v10  ;;  %s283_s4 = sld [smem:[#allocation7 + %s281_s22]]  ;;  %s312_s22 = scalar_lea.sflag [#allocation4], %s888_s8 }
  0x67   : > { %s293_s18 = sld [smem:[#allocation7 + %s291_s28]]  ;;  %v275_v34 = vstv %s273_s9  ;;  %s609_s28 = scalar_lea.vmem %s916_s7, 128 }
  0x68   : > { %v245_v12 = vsub.f32 %v231_v0, %v244_v11  ;;  %v246_v13 = vsub.f32 %v232_v1, %v244_v11  ;;  %v247_v14 = vsub.f32 %v233_v2, %v244_v11  ;;  %v248_v15 = vsub.f32 %v234_v3, %v244_v11  ;;  %s303_s19 = sld [smem:[#allocation7 + %s301_s27]]  ;;  %p610_p4 = scmp.ne.s32.totalorder %s916_s7, %s609_s28 }
  0x69   : > { %v284_v35 = vstv %s282_s10  ;;  %v294_v36 = vstv %s292_s11  ;;  %s706_s27 = smov [#allocation9]  }
  0x6a   : > { %v249_v16 = vmul.f32 %v245_v12, %v245_v12  ;;  %v250_v17 = vmul.f32 %v246_v13, %v246_v13  ;;  %v251_v18 = vmul.f32 %v247_v14, %v247_v14  ;;  %v252_v19 = vmul.f32 %v248_v15, %v248_v15  ;;  %p611_p0 = pnand %p610_p4, %p988_p12  ;;  %s613_s9 = sshll.u32 %s706_s27, 4  ;;  %s614_s9 = int_to_ptr.vmem [resolvable:$false] %s613_s9 }
  0x6b   : > { %v304_v37 = vstv %s302_s15  ;;  %v278_v43 = vstv %s274_s20  ;;  %s615_s21 = scalar_lea.vmem %s614_s9, 256  ;;  %p616_p10 = scmp.lt.s32.totalorder %s916_s7, %s614_s9 }
  0x6c   : > { %v253_v20 = vsel %vm235_vm0, %v249_v16, 0.0  ;;  %v254_v21 = vsel %vm235_vm0, %v250_v17, 0.0  ;;  %v256_v22 = vsel %vm235_vm0, %v251_v18, 0.0  ;;  %v258_v24 = vsel %vm235_vm0, %v252_v19, 0.0  ;;  %p612_p5 = pneg %p611_p0  ;;  %p617_p11 = scmp.lt.s32.totalorder %s615_s21, %s609_s28 }
  0x6d   : > { %v255_v23 = vadd.f32 %v254_v21, %v253_v20  ;;  %v287_v44 = vstv %s283_s4  ;;  %v297_v45 = vstv %s293_s18 }
  0x6e   : > { %v307_v46 = vstv %s303_s19  ;;  %p618_p3 = por %p617_p11, %p616_p10 }
  0x6f   : > { %v257_v25 = vadd.f32 %v256_v22, %v255_v23 }
  0x70   : > { %p619_p7 = pnand %p618_p3, %p612_p5 }
  0x71   : > { %v259_v26 = vadd.f32 %v258_v24, %v257_v25 }
  0x73   : > { %v261_v27 = vmul.f32 0.33333334, %v259_v26 }
  0x75   : > { %547 = vrsqrt.f32 %v261_v27  ;;  %vm264_vm1 = vcmp.eq.f32.partialorder %v261_v27, inf  ;;  %v267_v29 = vand.u32 2147483648, %v261_v27  ;;  %vm266_vm2 = vcmp.eq.f32.partialorder %v261_v27, 0.0 }
  0x7f   : > { %v548_v28 = vpop.eup %547 }
  0x80   : > { %v263_v30 = vmul.f32 %v548_v28, %v261_v27 }
  0x82   : > { %v265_v31 = vsel %vm264_vm1, %v261_v27, %v263_v30 }
  0x83   : > { %v268_v32 = vsel %vm266_vm2, %v267_v29, %v265_v31 }
  0x84   : > { %v269_v33 = vadd.f32 1e-06, %v268_v32 }
  0x86   : > { %549 = vrcp.f32 %v269_v33 }
  0x90   : > { %v550_v38 = vpop.eup %549 }
  0x91   : > { %v276_v39 = vmul.f32 %v550_v38, %v275_v34  ;;  %v285_v40 = vmul.f32 %v550_v38, %v284_v35  ;;  %v295_v41 = vmul.f32 %v550_v38, %v294_v36  ;;  %v305_v42 = vmul.f32 %v550_v38, %v304_v37 }
  0x93   : > { %v277_v47 = vmul.f32 %v276_v39, %v245_v12  ;;  %v286_v48 = vmul.f32 %v285_v40, %v246_v13  ;;  %v296_v49 = vmul.f32 %v295_v41, %v247_v14  ;;  %v306_v50 = vmul.f32 %v305_v42, %v248_v15 }
  0x95   : > { %v279_v51 = vadd.f32 %v278_v43, %v277_v47  ;;  %v288_v52 = vadd.f32 %v287_v44, %v286_v48  ;;  %v298_v53 = vadd.f32 %v297_v45, %v296_v49  ;;  %v308_v54 = vadd.f32 %v307_v46, %v306_v50 }
  0x97   : > { %280 = vst [vmem:[%s230_s6] sm:$0x3] %v279_v51  ;;  %450 = vst [vmem:[%s230_s6 + $0x2] sm:$0x3] %v288_v52 }
  0x98   : > { %451 = vst [vmem:[%s230_s6 + $0x4] sm:$0x3] %v298_v53  ;;  %452 = vst [vmem:[%s230_s6 + $0x6] sm:$0x3] %v308_v54 }
  0x99   : > { %622 = shalt.err (!%p619_p7)
}
  0x9a   : > { %s623_s10 = scalar_lea.hbm %s922_s30, 128  ;;  %s627_s20 = scalar_lea.hbm %s974_s3, 256 }
  0x9b   : > { %p624_p9 = scmp.ne.s32.totalorder %s922_s30, %s623_s10  ;;  %p628_p1 = scmp.lt.u32.totalorder %s922_s30, %s974_s3 }
  0x9c   : > { %p629_p8 = scmp.lt.u32.totalorder %s627_s20, %s623_s10  ;;  %p631_p4 = scmp.lt.u32.totalorder %s623_s10, %s922_s30 }
  0x9d   : > { %p625_p2 = pnand %p624_p9, %p988_p12 }
  0x9e   : > { %p630_p13 = por %p629_p8, %p628_p1 }
  0x9f   : > { %p626_p6 = pneg %p625_p2 }
  0xa0   : > { %p632_p0 = por %p631_p4, %p630_p13 }
  0xa2   : > { %p633_p5 = pnand %p632_p0, %p626_p6 }
  0xa4   : > { %636 = shalt.err (!%p633_p5)
}
  0xa5   : > { %s707_s19 = smov 32   ;;  %s708_s6 = smov 2  }
  0xa6   : > { %470 = dma.vmem_to_hbm [thread:$0]  (%p988_p12), %s916_s7, 128, %s922_s30, %s312_s22, %s707_s19, %s707_s19, %s708_s6  }
  0xa7 PF: > { %s341_s25 = sand.u32 1, %s679_s12   ;;  %p989_p10 = scmp.ne.s32.totalorder %s982_s24, 0 }
  0xa8   : > { %p990_p11 = scmp.ge.s32.totalorder %s699_s17, 2  ;;  %s342_s29 = scalar_lea.sflag [#allocation4], %s341_s25 }
  0xaa   : > { %p484_p3 = pnand %p990_p11, %p989_p10 }
  0xac   : > { %674 = dma.done.wait (!%p484_p3), %s342_s29, 128  }
  0xad   : > { %676 = vsyncadd (!%p484_p3), %s342_s29, 4294967168  ;;  %s21_s17 = sadd.s32 1, %s699_s17   ;;  %s991_s12 = smov %s683_s13 }
  0xae   : > { %p18_p7 = scmp.ge.s32.totalorder %s21_s17, 4   ;;  %s992_s13 = smov %s687_s14 }
  0xaf   : > { %s993_s14 = smov %s845_s26  ;;  %s994_s15 = smov %s695_s16 }
  0xb0   : > { %s995_s16 = smov %s997_s5  ;;  %20 = sbr.rel (!%p18_p7) target bundleno = 8 (0x8), region = 90 }
  0xb7   :  { %347 = vsyncpa [#allocation3], 1 }
  0xb8   :  { %349 = vsyncpa [#allocation3 + $0x1], 1 }
  0xb9   :  { %350 = vsyncpa [#allocation4], 1 }
  0xba   :  { %352 = vsyncpa [#allocation4 + $0x1], 1 }
  0xbb   :  { %353 = vsyncpa [#allocation5], 1 }
  0xbc   :  { %355 = vsyncpa [#allocation5 + $0x1], 1 }
  0xbd   :  { %356 = vsyncpa [#allocation6], 1 }
  0xbe   :  { %358 = vsyncpa [#allocation6 + $0x1], 1 }

</bundles_post_ra>
